<compile_context>
chip_gen: v7x
topology: tpu7x:2x2x1
jax: 0.10.0
libtpu: 0.0.40
codegen_flags: <defaults>
</compile_context>

<pallas_src>
import jax
import jax.numpy as jnp
from jax.experimental import pallas as pl
from jax.experimental.pallas import tpu as pltpu


def _ce_kernel(logits_ref, tgt_ref, wpix_ref, lacc_ref, wacc_ref):
    """One (C, R_tile, 128) logits block of one (batch, outer-chunk) slice.

    logits_ref: (C, R_tile, 128)  class-major, pixels over sublanes x lanes
    tgt_ref:    (R_tile, 128) int32 target class ids
    wpix_ref:   (R_tile, 128) f32 per-pixel weight (0 for ignored / padded px)
    lacc_ref / wacc_ref: (R_tile, 128) f32 accumulators (resident across j)
    """
    j = pl.program_id(2)

    @pl.when(j == 0)
    def _():
        lacc_ref[...] = jnp.zeros_like(lacc_ref)
        wacc_ref[...] = jnp.zeros_like(wacc_ref)

    C = logits_ref.shape[0]
    tgt = tgt_ref[...]                       # (R_tile, 128) int32
    w = wpix_ref[...]                        # (R_tile, 128) f32

    # Pass 1: per-pixel max over classes (cross-vreg VALU maxima, no XLU).
    m = logits_ref[0].astype(jnp.float32)
    for c in range(1, C):
        m = jnp.maximum(m, logits_ref[c].astype(jnp.float32))

    # Pass 2: numerically stable sum-exp + target-logit gather via scalar
    # class-id compares (no (C, R, 128) iota / one-hot temporaries).
    s = jnp.zeros_like(m)
    tl = jnp.zeros_like(m)
    for c in range(C):
        lc = logits_ref[c].astype(jnp.float32)
        s = s + jnp.exp(lc - m)
        tl = tl + jnp.where(tgt == c, lc, 0.0)

    lse = m + jnp.log(s)
    lacc_ref[...] += (lse - tl) * w
    wacc_ref[...] += w


def _pick_r_tile(C, itemsize):
    """Max pixel-rows (of 128 lanes) per block from a temp-inclusive VMEM budget."""
    per_row = 128 * (
        2 * C * itemsize        # logits block, double-buffered
        + 2 * 4 + 2 * 4         # target int32 + w_pix f32 blocks, x2 buffers
        + 2 * 2 * 4             # two f32 accumulator outputs, 2 buffers each
        + 6 * 4)                # in-kernel f32 temporaries (m, s, tl, lc, ...)
    budget = 14 * 1024 * 1024
    r = max(8, budget // per_row)
    return int(min(r, 4096)) // 8 * 8


def _weighted_ce_sums(logits_nchw, target_nhw, class_weight, ignore_index):
    """Returns (sum of weighted per-pixel CE, sum of weights of valid pixels)."""
    N, C, H, W = logits_nchw.shape
    HW = H * W
    logits = logits_nchw.reshape(N, C, HW)            # free, row-major
    tgt = target_nhw.reshape(N, HW).astype(jnp.int32)

    # Hoisted gather: per-pixel class weight; 0 for ignore_index and for labels
    # outside [0, C) (PyTorch would raise on the latter; here they simply
    # contribute nothing to either sum, matching the previous kernel).
    cw = class_weight.astype(jnp.float32)
    valid = (tgt != ignore_index) & (tgt >= 0) & (tgt < C)
    w_pix = jnp.where(valid, cw[jnp.clip(tgt, 0, C - 1)], 0.0)

    itemsize = jnp.dtype(logits.dtype).itemsize
    R = -(-HW // 128)                                  # pixel-rows of 128 lanes
    r_max = _pick_r_tile(C, itemsize)

    # Split pixel rows onto an extra "parallel" axis when N == 1 so both of
    # v7x's TensorCores get work; neutral on single-core v5e/v6e.
    p_outer = 2 if (N == 1 and R >= 64) else 1
    nj_total = max(p_outer, -(-R // r_max))
    nj_total = -(-nj_total // p_outer) * p_outer
    r_tile = -(-R // nj_total)
    if nj_total > 1:
        r_tile = -(-r_tile // 8) * 8                   # sublane alignment
    r_pad = r_tile * nj_total
    nj = nj_total // p_outer

    hw_pad = r_pad * 128
    if hw_pad != HW:
        # Padded pixels carry zero logits and zero weight -> contribute exactly
        # 0 to both sums; common shapes (HW a multiple of the tile) skip this.
        logits = jnp.pad(logits, ((0, 0), (0, 0), (0, hw_pad - HW)))
        tgt = jnp.pad(tgt, ((0, 0), (0, hw_pad - HW)))
        w_pix = jnp.pad(w_pix, ((0, 0), (0, hw_pad - HW)))

    logits = logits.reshape(N, C, r_pad, 128)
    tgt = tgt.reshape(N, r_pad, 128)
    w_pix = w_pix.reshape(N, r_pad, 128)

    lpart, wpart = pl.pallas_call(
        _ce_kernel,
        out_shape=(jax.ShapeDtypeStruct((N, p_outer, r_tile, 128), jnp.float32),
                   jax.ShapeDtypeStruct((N, p_outer, r_tile, 128), jnp.float32)),
        grid_spec=pltpu.PrefetchScalarGridSpec(
            num_scalar_prefetch=0,
            grid=(N, p_outer, nj),
            in_specs=[
                # (C, r_tile, 128) logits block: class-major, pixel rows dense.
                pl.BlockSpec((None, C, r_tile, 128),
                             lambda n, p, j: (n, 0, p * nj + j, 0)),
                # (r_tile, 128) targets / per-pixel weights.
                pl.BlockSpec((None, r_tile, 128),
                             lambda n, p, j: (n, p * nj + j, 0)),
                pl.BlockSpec((None, r_tile, 128),
                             lambda n, p, j: (n, p * nj + j, 0)),
            ],
            out_specs=[
                # Output blocks ARE the accumulators: constant across the
                # reduction axis j, distinct per (batch, outer-chunk).
                pl.BlockSpec((None, None, r_tile, 128),
                             lambda n, p, j: (n, p, 0, 0)),
                pl.BlockSpec((None, None, r_tile, 128),
                             lambda n, p, j: (n, p, 0, 0)),
            ],
        ),
        compiler_params=pltpu.CompilerParams(
            dimension_semantics=("parallel", "parallel", "arbitrary"),
            vmem_limit_bytes=48 * 1024 * 1024),
    )(logits, tgt, w_pix)

    # Tiny final reduction in JAX (a few hundred KB at most).
    return jnp.sum(lpart), jnp.sum(wpart)


def _scale_target_nearest(target, out_hw):
    """F.interpolate(target[:,None].float(), size, mode='nearest').squeeze(1).long()"""
    N, Hin, Win = target.shape
    Hout, Wout = out_hw
    # PyTorch 'nearest': src_idx = floor(dst_idx * in / out)
    rows = (jnp.arange(Hout) * Hin) // Hout
    cols = (jnp.arange(Wout) * Win) // Wout
    return target[:, rows[:, None], cols[None, :]]


class FSCELossPallas:
    """JAX/Pallas port of FSCELoss (forward only)."""

    def __init__(self, configer=None):
        self.configer = configer or {}
        self.weight = None
        if 'ce_weight' in self.configer:
            self.weight = jnp.asarray(self.configer['ce_weight'],
                                      dtype=jnp.float32)
        self.reduction = self.configer.get('ce_reduction', 'elementwise_mean')
        self.ignore_index = self.configer.get('ce_ignore_index', -1)

    def _ce(self, logits_nchw, target_nhw):
        N, C, H, W = logits_nchw.shape
        cw = self.weight if self.weight is not None else jnp.ones(
            (C,), jnp.float32)
        # No transpose / upcast here: the kernel consumes NCHW directly (bf16
        # logits stream as bf16 and are upcast to f32 inside the kernel).
        lsum, wsum = _weighted_ce_sums(logits_nchw, target_nhw, cw,
                                       self.ignore_index)
        if self.reduction in ('elementwise_mean', 'mean'):
            # Matches PyTorch: NaN if every target equals ignore_index.
            return lsum / wsum
        elif self.reduction == 'sum':
            return lsum
        else:
            # TODO(synk): per-pixel reduction='none' is not exposed by this wrapper.
            raise NotImplementedError(
                "reduction='%s' is not supported by the Pallas wrapper"
                % self.reduction)

    def __call__(self, inputs, *targets, weights=None, **kwargs):
        if isinstance(inputs, (tuple, list)):
            if weights is None:
                weights = [1.0] * len(inputs)
            loss = 0.0
            for i in range(len(inputs)):
                t = targets[i] if len(targets) > 1 else targets[0]
                tgt = _scale_target_nearest(
                    t, (inputs[i].shape[2], inputs[i].shape[3]))
                loss = loss + weights[i] * self._ce(inputs[i], tgt)
            return loss
        else:
            tgt = _scale_target_nearest(
                targets[0], (inputs.shape[2], inputs.shape[3]))
            return self._ce(inputs, tgt)


def _reference_loss(logits_nchw, target_nhw, class_w, ignore_index):
    # pure-JAX reference for sanity check
    N, C, H, W = logits_nchw.shape
    lg = jnp.transpose(logits_nchw, (0, 2, 3, 1)).reshape(-1, C)
    lg = lg.astype(jnp.float32)
    t = target_nhw.reshape(-1).astype(jnp.int32)
    valid = t != ignore_index
    t_safe = jnp.where(valid, t, 0)
    lse = jax.nn.logsumexp(lg, axis=-1)
    tl = jnp.take_along_axis(lg, t_safe[:, None], axis=-1)[:, 0]
    w = class_w[t_safe] * valid.astype(jnp.float32)
    return jnp.sum((lse - tl) * w) / jnp.sum(w)


if __name__ == "__main__":
    key = jax.random.PRNGKey(0)
    N, C, H, W = 2, 4, 16, 16
    Ht, Wt = 32, 32  # target at higher res; module nearest-downsamples to H,W

    k1, k2, k3 = jax.random.split(key, 3)
    logits = jax.random.normal(k1, (N, C, H, W), dtype=jnp.float32)
    target = jax.random.randint(k2, (N, Ht, Wt), -1, C)  # includes ignore=-1

    configer = {
        'ce_weight': [1.0, 2.0, 0.5, 1.5],
        'ce_reduction': 'elementwise_mean',
        'ce_ignore_index': -1,
    }
    cw = jnp.asarray(configer['ce_weight'], jnp.float32)
    loss_fn = FSCELossPallas(configer)

    # ---- single-input path ----
    loss = loss_fn(logits, target)
    loss = jax.block_until_ready(loss)
    tgt_scaled = _scale_target_nearest(target, (H, W))
    ref = _reference_loss(logits, tgt_scaled, cw, -1)
    assert jnp.allclose(loss, ref, rtol=1e-5, atol=1e-5), (loss, ref)

    # ---- multi-scale (tuple) path with aux head at 8x8 (exercises padding) ----
    logits_aux = jax.random.normal(k3, (N, C, 8, 8), dtype=jnp.float32)
    loss_multi = loss_fn((logits, logits_aux), target, weights=[1.0, 0.4])
    loss_multi = jax.block_until_ready(loss_multi)
    tgt_aux = _scale_target_nearest(target, (8, 8))
    ref_multi = (ref + 0.4 * _reference_loss(logits_aux, tgt_aux, cw, -1))
    assert jnp.allclose(loss_multi, ref_multi, rtol=1e-5, atol=1e-5), (
        loss_multi, ref_multi)

    print("KERNEL_OK")
</pallas_src>

<mosaic_0001>
module attributes {stable_mosaic.version = 11 : i64} {
  func.func @_ce_kernel(%arg0: i32, %arg1: i32, %arg2: i32, %arg3: memref<1x4x2x128xf32, #tpu.memory_space<vmem>>, %arg4: memref<1x2x128xi32, #tpu.memory_space<vmem>>, %arg5: memref<1x2x128xf32, #tpu.memory_space<vmem>>, %arg6: memref<1x1x2x128xf32, #tpu.memory_space<vmem>>, %arg7: memref<1x1x2x128xf32, #tpu.memory_space<vmem>>) attributes {dimension_semantics = [#tpu.dimension_semantics<parallel>, #tpu.dimension_semantics<parallel>, #tpu.dimension_semantics<arbitrary>], iteration_bounds = array<i64: 2, 1, 1>, scalar_prefetch = 0 : i64, scratch_operands = 0 : i64, tpu.core_type = #tpu.core_type<tc>, window_params = [{transform_indices = @transform_0, window_bounds = array<i64: 1, 4, 2, 128>}, {transform_indices = @transform_1, window_bounds = array<i64: 1, 2, 128>}, {transform_indices = @transform_2, window_bounds = array<i64: 1, 2, 128>}, {transform_indices = @transform_3, window_bounds = array<i64: 1, 1, 2, 128>}, {transform_indices = @transform_4, window_bounds = array<i64: 1, 1, 2, 128>}]} {
    %c0_i32 = arith.constant 0 : i32
    %0 = arith.cmpi eq, %arg2, %c0_i32 : i32
    %1 = arith.extui %0 : i1 to i32
    %c0_i32_0 = arith.constant 0 : i32
    %2 = arith.cmpi ne, %1, %c0_i32_0 : i32
    scf.if %2 {
      %cst_57 = arith.constant 0.000000e+00 : f32
      %76 = vector.broadcast %cst_57 : f32 to vector<2x128xf32>
      %c0_58 = arith.constant 0 : index
      %c0_59 = arith.constant 0 : index
      %c0_60 = arith.constant 0 : index
      %c0_61 = arith.constant 0 : index
      %77 = vector.load %arg6[%c0_58, %c0_59, %c0_60, %c0_61] : memref<1x1x2x128xf32, #tpu.memory_space<vmem>>, vector<1x1x2x128xf32>
      %78 = vector.shape_cast %77 : vector<1x1x2x128xf32> to vector<2x128xf32>
      %79 = vector.shape_cast %76 : vector<2x128xf32> to vector<1x1x2x128xf32>
      tpu.vector_store %arg6[%c0_58, %c0_59, %c0_60, %c0_61], %79 {strides = array<i32>} : memref<1x1x2x128xf32, #tpu.memory_space<vmem>>, vector<1x1x2x128xf32>,
      %cst_62 = arith.constant 0.000000e+00 : f32
      %80 = vector.broadcast %cst_62 : f32 to vector<2x128xf32>
      %c0_63 = arith.constant 0 : index
      %c0_64 = arith.constant 0 : index
      %c0_65 = arith.constant 0 : index
      %c0_66 = arith.constant 0 : index
      %81 = vector.load %arg7[%c0_63, %c0_64, %c0_65, %c0_66] : memref<1x1x2x128xf32, #tpu.memory_space<vmem>>, vector<1x1x2x128xf32>
      %82 = vector.shape_cast %81 : vector<1x1x2x128xf32> to vector<2x128xf32>
      %83 = vector.shape_cast %80 : vector<2x128xf32> to vector<1x1x2x128xf32>
      tpu.vector_store %arg7[%c0_63, %c0_64, %c0_65, %c0_66], %83 {strides = array<i32>} : memref<1x1x2x128xf32, #tpu.memory_space<vmem>>, vector<1x1x2x128xf32>,
    } else {
    }
    %c0 = arith.constant 0 : index
    %c0_1 = arith.constant 0 : index
    %c0_2 = arith.constant 0 : index
    %3 = vector.load %arg4[%c0, %c0_1, %c0_2] : memref<1x2x128xi32, #tpu.memory_space<vmem>>, vector<1x2x128xi32>
    %4 = vector.shape_cast %3 : vector<1x2x128xi32> to vector<2x128xi32>
    %c0_3 = arith.constant 0 : index
    %c0_4 = arith.constant 0 : index
    %c0_5 = arith.constant 0 : index
    %5 = vector.load %arg5[%c0_3, %c0_4, %c0_5] : memref<1x2x128xf32, #tpu.memory_space<vmem>>, vector<1x2x128xf32>
    %6 = vector.shape_cast %5 : vector<1x2x128xf32> to vector<2x128xf32>
    %c0_6 = arith.constant 0 : index
    %c0_7 = arith.constant 0 : index
    %c0_8 = arith.constant 0 : index
    %c0_9 = arith.constant 0 : index
    %7 = vector.load %arg3[%c0_6, %c0_7, %c0_8, %c0_9] : memref<1x4x2x128xf32, #tpu.memory_space<vmem>>, vector<1x1x2x128xf32>
    %8 = vector.shape_cast %7 : vector<1x1x2x128xf32> to vector<2x128xf32>
    %c0_10 = arith.constant 0 : index
    %c1 = arith.constant 1 : index
    %c0_11 = arith.constant 0 : index
    %c0_12 = arith.constant 0 : index
    %9 = vector.load %arg3[%c0_10, %c1, %c0_11, %c0_12] : memref<1x4x2x128xf32, #tpu.memory_space<vmem>>, vector<1x1x2x128xf32>
    %10 = vector.shape_cast %9 : vector<1x1x2x128xf32> to vector<2x128xf32>
    %11 = arith.maximumf %8, %10 : vector<2x128xf32>
    %c0_13 = arith.constant 0 : index
    %c2 = arith.constant 2 : index
    %c0_14 = arith.constant 0 : index
    %c0_15 = arith.constant 0 : index
    %12 = vector.load %arg3[%c0_13, %c2, %c0_14, %c0_15] : memref<1x4x2x128xf32, #tpu.memory_space<vmem>>, vector<1x1x2x128xf32>
    %13 = vector.shape_cast %12 : vector<1x1x2x128xf32> to vector<2x128xf32>
    %14 = arith.maximumf %11, %13 : vector<2x128xf32>
    %c0_16 = arith.constant 0 : index
    %c3 = arith.constant 3 : index
    %c0_17 = arith.constant 0 : index
    %c0_18 = arith.constant 0 : index
    %15 = vector.load %arg3[%c0_16, %c3, %c0_17, %c0_18] : memref<1x4x2x128xf32, #tpu.memory_space<vmem>>, vector<1x1x2x128xf32>
    %16 = vector.shape_cast %15 : vector<1x1x2x128xf32> to vector<2x128xf32>
    %17 = arith.maximumf %14, %16 : vector<2x128xf32>
    %cst = arith.constant 0.000000e+00 : f32
    %18 = vector.broadcast %cst : f32 to vector<2x128xf32>
    %cst_19 = arith.constant 0.000000e+00 : f32
    %19 = vector.broadcast %cst_19 : f32 to vector<2x128xf32>
    %c0_20 = arith.constant 0 : index
    %c0_21 = arith.constant 0 : index
    %c0_22 = arith.constant 0 : index
    %c0_23 = arith.constant 0 : index
    %20 = vector.load %arg3[%c0_20, %c0_21, %c0_22, %c0_23] : memref<1x4x2x128xf32, #tpu.memory_space<vmem>>, vector<1x1x2x128xf32>
    %21 = vector.shape_cast %20 : vector<1x1x2x128xf32> to vector<2x128xf32>
    %22 = arith.subf %21, %17 : vector<2x128xf32>
    %23 = math.exp %22 : vector<2x128xf32>
    %24 = arith.addf %18, %23 : vector<2x128xf32>
    %c0_i32_24 = arith.constant 0 : i32
    %25 = vector.broadcast %c0_i32_24 : i32 to vector<2x128xi32>
    %26 = arith.cmpi eq, %4, %25 : vector<2x128xi32>
    %cst_25 = arith.constant 0.000000e+00 : f32
    %27 = vector.broadcast %cst_25 : f32 to vector<2x128xf32>
    %28 = arith.select %26, %21, %27 : vector<2x128xi1>, vector<2x128xf32>
    %29 = arith.addf %19, %28 : vector<2x128xf32>
    %c0_26 = arith.constant 0 : index
    %c1_27 = arith.constant 1 : index
    %c0_28 = arith.constant 0 : index
    %c0_29 = arith.constant 0 : index
    %30 = vector.load %arg3[%c0_26, %c1_27, %c0_28, %c0_29] : memref<1x4x2x128xf32, #tpu.memory_space<vmem>>, vector<1x1x2x128xf32>
    %31 = vector.shape_cast %30 : vector<1x1x2x128xf32> to vector<2x128xf32>
    %32 = arith.subf %31, %17 : vector<2x128xf32>
    %33 = math.exp %32 : vector<2x128xf32>
    %34 = arith.addf %24, %33 : vector<2x128xf32>
    %c1_i32 = arith.constant 1 : i32
    %35 = vector.broadcast %c1_i32 : i32 to vector<2x128xi32>
    %36 = arith.cmpi eq, %4, %35 : vector<2x128xi32>
    %cst_30 = arith.constant 0.000000e+00 : f32
    %37 = vector.broadcast %cst_30 : f32 to vector<2x128xf32>
    %38 = arith.select %36, %31, %37 : vector<2x128xi1>, vector<2x128xf32>
    %39 = arith.addf %29, %38 : vector<2x128xf32>
    %c0_31 = arith.constant 0 : index
    %c2_32 = arith.constant 2 : index
    %c0_33 = arith.constant 0 : index
    %c0_34 = arith.constant 0 : index
    %40 = vector.load %arg3[%c0_31, %c2_32, %c0_33, %c0_34] : memref<1x4x2x128xf32, #tpu.memory_space<vmem>>, vector<1x1x2x128xf32>
    %41 = vector.shape_cast %40 : vector<1x1x2x128xf32> to vector<2x128xf32>
    %42 = arith.subf %41, %17 : vector<2x128xf32>
    %43 = math.exp %42 : vector<2x128xf32>
    %44 = arith.addf %34, %43 : vector<2x128xf32>
    %c2_i32 = arith.constant 2 : i32
    %45 = vector.broadcast %c2_i32 : i32 to vector<2x128xi32>
    %46 = arith.cmpi eq, %4, %45 : vector<2x128xi32>
    %cst_35 = arith.constant 0.000000e+00 : f32
    %47 = vector.broadcast %cst_35 : f32 to vector<2x128xf32>
    %48 = arith.select %46, %41, %47 : vector<2x128xi1>, vector<2x128xf32>
    %49 = arith.addf %39, %48 : vector<2x128xf32>
    %c0_36 = arith.constant 0 : index
    %c3_37 = arith.constant 3 : index
    %c0_38 = arith.constant 0 : index
    %c0_39 = arith.constant 0 : index
    %50 = vector.load %arg3[%c0_36, %c3_37, %c0_38, %c0_39] : memref<1x4x2x128xf32, #tpu.memory_space<vmem>>, vector<1x1x2x128xf32>
    %51 = vector.shape_cast %50 : vector<1x1x2x128xf32> to vector<2x128xf32>
    %52 = arith.subf %51, %17 : vector<2x128xf32>
    %53 = math.exp %52 : vector<2x128xf32>
    %54 = arith.addf %44, %53 : vector<2x128xf32>
    %c3_i32 = arith.constant 3 : i32
    %55 = vector.broadcast %c3_i32 : i32 to vector<2x128xi32>
    %56 = arith.cmpi eq, %4, %55 : vector<2x128xi32>
    %cst_40 = arith.constant 0.000000e+00 : f32
    %57 = vector.broadcast %cst_40 : f32 to vector<2x128xf32>
    %58 = arith.select %56, %51, %57 : vector<2x128xi1>, vector<2x128xf32>
    %59 = arith.addf %49, %58 : vector<2x128xf32>
    %60 = math.log %54 : vector<2x128xf32>
    %61 = arith.addf %17, %60 : vector<2x128xf32>
    %c0_41 = arith.constant 0 : index
    %c0_42 = arith.constant 0 : index
    %c0_43 = arith.constant 0 : index
    %c0_44 = arith.constant 0 : index
    %62 = vector.load %arg6[%c0_41, %c0_42, %c0_43, %c0_44] : memref<1x1x2x128xf32, #tpu.memory_space<vmem>>, vector<1x1x2x128xf32>
    %63 = vector.shape_cast %62 : vector<1x1x2x128xf32> to vector<2x128xf32>
    %64 = arith.subf %61, %59 : vector<2x128xf32>
    %65 = arith.mulf %64, %6 : vector<2x128xf32>
    %66 = arith.addf %63, %65 : vector<2x128xf32>
    %c0_45 = arith.constant 0 : index
    %c0_46 = arith.constant 0 : index
    %c0_47 = arith.constant 0 : index
    %c0_48 = arith.constant 0 : index
    %67 = vector.load %arg6[%c0_45, %c0_46, %c0_47, %c0_48] : memref<1x1x2x128xf32, #tpu.memory_space<vmem>>, vector<1x1x2x128xf32>
    %68 = vector.shape_cast %67 : vector<1x1x2x128xf32> to vector<2x128xf32>
    %69 = vector.shape_cast %66 : vector<2x128xf32> to vector<1x1x2x128xf32>
    tpu.vector_store %arg6[%c0_45, %c0_46, %c0_47, %c0_48], %69 {strides = array<i32>} : memref<1x1x2x128xf32, #tpu.memory_space<vmem>>, vector<1x1x2x128xf32>,
    %c0_49 = arith.constant 0 : index
    %c0_50 = arith.constant 0 : index
    %c0_51 = arith.constant 0 : index
    %c0_52 = arith.constant 0 : index
    %70 = vector.load %arg7[%c0_49, %c0_50, %c0_51, %c0_52] : memref<1x1x2x128xf32, #tpu.memory_space<vmem>>, vector<1x1x2x128xf32>
    %71 = vector.shape_cast %70 : vector<1x1x2x128xf32> to vector<2x128xf32>
    %72 = arith.addf %71, %6 : vector<2x128xf32>
    %c0_53 = arith.constant 0 : index
    %c0_54 = arith.constant 0 : index
    %c0_55 = arith.constant 0 : index
    %c0_56 = arith.constant 0 : index
    %73 = vector.load %arg7[%c0_53, %c0_54, %c0_55, %c0_56] : memref<1x1x2x128xf32, #tpu.memory_space<vmem>>, vector<1x1x2x128xf32>
    %74 = vector.shape_cast %73 : vector<1x1x2x128xf32> to vector<2x128xf32>
    %75 = vector.shape_cast %72 : vector<2x128xf32> to vector<1x1x2x128xf32>
    tpu.vector_store %arg7[%c0_53, %c0_54, %c0_55, %c0_56], %75 {strides = array<i32>} : memref<1x1x2x128xf32, #tpu.memory_space<vmem>>, vector<1x1x2x128xf32>,
    return
  }
  func.func @transform_0(%arg0: i32, %arg1: i32, %arg2: i32) -> (i32, i32, i32, i32) {
    %c1_i32 = arith.constant 1 : i32
    %0 = arith.muli %arg1, %c1_i32 : i32
    %1 = arith.addi %0, %arg2 : i32
    %c0_i32 = arith.constant 0 : i32
    %c0_i32_0 = arith.constant 0 : i32
    %c0_i32_1 = arith.constant 0 : i32
    return %arg0, %c0_i32, %1, %c0_i32_0 : i32, i32, i32, i32
  }
  func.func @transform_1(%arg0: i32, %arg1: i32, %arg2: i32) -> (i32, i32, i32) {
    %c1_i32 = arith.constant 1 : i32
    %0 = arith.muli %arg1, %c1_i32 : i32
    %1 = arith.addi %0, %arg2 : i32
    %c0_i32 = arith.constant 0 : i32
    %c0_i32_0 = arith.constant 0 : i32
    return %arg0, %1, %c0_i32 : i32, i32, i32
  }
  func.func @transform_2(%arg0: i32, %arg1: i32, %arg2: i32) -> (i32, i32, i32) {
    %c1_i32 = arith.constant 1 : i32
    %0 = arith.muli %arg1, %c1_i32 : i32
    %1 = arith.addi %0, %arg2 : i32
    %c0_i32 = arith.constant 0 : i32
    %c0_i32_0 = arith.constant 0 : i32
    return %arg0, %1, %c0_i32 : i32, i32, i32
  }
  func.func @transform_3(%arg0: i32, %arg1: i32, %arg2: i32) -> (i32, i32, i32, i32) {
    %c0_i32 = arith.constant 0 : i32
    %c0_i32_0 = arith.constant 0 : i32
    %c0_i32_1 = arith.constant 0 : i32
    return %arg0, %arg1, %c0_i32, %c0_i32_0 : i32, i32, i32, i32
  }
  func.func @transform_4(%arg0: i32, %arg1: i32, %arg2: i32) -> (i32, i32, i32, i32) {
    %c0_i32 = arith.constant 0 : i32
    %c0_i32_0 = arith.constant 0 : i32
    %c0_i32_1 = arith.constant 0 : i32
    return %arg0, %arg1, %c0_i32, %c0_i32_0 : i32, i32, i32, i32
  }
}

</mosaic_0001>

<bundles_post_ra>
// kernel: tpu_custom_call.1
= control target key start
LH: loop header
LB: loop body
LE: loop exit
PB: predicated region body
PF: predicated region fallthrough
CT: control target
= control target key end

     0   :  { %10 = vsyncpa [#allocation3], 0  ;;  %s1204_s0 = inlined_call_operand.hbm [shape: f32[2,4,2,128], index: 0, kind: input, shape index: {}]   ;;  %s1205_s1 = inlined_call_operand.hbm [shape: s32[2,2,128], index: 1, kind: input, shape index: {}]   ;;  %s1206_s2 = inlined_call_operand.vmem [shape: f32[2,2,128], index: 2, kind: input, shape index: {}]   ;;  %s1207_s3 = inlined_call_operand.hbm [shape: f32[2,1,2,128], index: 3, kind: output, shape index: {0}]   ;;  %s1208_s4 = inlined_call_operand.hbm [shape: f32[2,1,2,128], index: 4, kind: output, shape index: {1}]  }
   0x1   :  { %12 = vsyncpa [#allocation3 + $0x1], 0 }
   0x2   :  { %13 = vsyncpa [#allocation6], 0 }
   0x3   :  { %15 = vsyncpa [#allocation6 + $0x1], 0 }
   0x4   :  { %16 = vsyncpa [#allocation4], 0 }
   0x5   :  { %18 = vsyncpa [#allocation4 + $0x1], 0 }
   0x6   :  { %19 = vsyncpa [#allocation9], 0 }
   0x7   :  { %21 = vsyncpa [#allocation9 + $0x1], 0  ;;  %s907_s15 = smov 0   ;;  %s909_s16 = smov 0  }
   0x8   :  { %s911_s17 = smov 0   ;;  %s913_s18 = smov 0  }
   0x9   :  { %s915_s19 = smov 0   ;;  %s917_s20 = smov 0  }
   0xa LB: > { %s585_s21 = sadd.s32 4294967295, %s873_s20   ;;  %s586_s22 = sadd.s32 4294967294, %s873_s20   ;;  %s873_s20 = sphi %s917_s20, %s27_s20   ;;  %s869_s19 = sphi %s915_s19, %s1227_s19   ;;  %s865_s18 = sphi %s913_s18, %s1226_s18   ;;  %s861_s17 = sphi %s911_s17, %s1225_s17   ;;  %s857_s16 = sphi %s909_s16, %s1224_s16   ;;  %s853_s15 = sphi %s907_s15, %s1223_s15  }
   0xb   : > { %s46_s23 = sadd.s32 1, %s869_s19  ;;  %s57_s24 = sadd.s32 1, %s861_s17 }
   0xc   : > { %p48_p0 = scmp.ge.s32.totalorder %s46_s23, 2  ;;  %p64_p1 = scmp.ne.s32.totalorder %s861_s17, %s857_s16 }
   0xd   : > { %p65_p2 = scmp.eq.s32.totalorder %s873_s20, 0  ;;  %p70_p3 = scmp.ne.s32.totalorder %s857_s16, %s853_s15 }
   0xe   : > { %s1229_s23 = smov (%p48_p0, %s46_s23), 0  ;;  %p71_p5 = scmp.eq.s32.totalorder %s585_s21, 0 }
   0xf   : > { %p948_p4 = por %p65_p2, %p64_p1  ;;  %s52_s26 = ssub.s32 %s869_s19, %s1229_s23 }
  0x10   : > { %p156_p6 = scmp.eq.s32.totalorder %s585_s21, 1  ;;  %p55_p7 = scmp.eq.s32.totalorder %s52_s26, 0 }
  0x11   : > { %p954_p8 = por %p71_p5, %p70_p3  ;;  %p162_p10 = scmp.eq.s32.totalorder %s586_s22, 1 }
  0x12   : > { %p958_p9 = por %p156_p6, %p64_p1  ;;  %p632_p13 = scmp.lt.s32.totalorder %s873_s20, 2 }
  0x13   : > { %s1212_s27 = scalar_select %p954_p8, 1, 0 }
  0x14   : > { %s1213_s28 = scalar_select %p958_p9, 1, 0 }
  0x15   : > { %s963_s29 = scalar_select %p55_p7, %s861_s17, %s57_s24  }
  0x16   : > { %p965_p11 = por %p162_p10, %p70_p3  ;;  %s972_s5 = sand.u32 1, %s861_s17  }
  0x17   : > { %s589_s6 = sshll.u32 %s972_s5, 3  ;;  %s609_s7 = sshll.u32 %s869_s19, 7 }
  0x18   : > { %s1214_s30 = scalar_select %p965_p11, 1, 0 }
  0x19   : > { %s979_s10 = scalar_lea.hbm %s1204_s0, %s609_s7  ;;  %s214_s11 = scalar_lea.vmem [#allocation2], %s589_s6 }
  0x1a   : > { %s223_s12 = sshll.u32 %s214_s11, 4  ;;  %p985_p0 = pnand %p632_p13, %p948_p4  ;;  %s981_s12 = int_to_ptr.vmem [resolvable:$true] %s223_s12 }
  0x1b   : > { %s211_s14 = scalar_lea.sflag [#allocation3], %s972_s5  ;;  %s695_s21 = scalar_lea.hbm %s979_s10, 128 }
  0x1c   : > { %p696_p2 = scmp.ne.s32.totalorder %s979_s10, %s695_s21  ;;  %p697_p3 = pneg %p985_p0 }
  0x1d   : > { %s700_s25 = scalar_lea.hbm %s1204_s0, 256  ;;  %p701_p4 = scmp.lt.u32.totalorder %s979_s10, %s1204_s0 }
  0x1e   : > { %p698_p5 = pnand %p697_p3, %p696_p2  ;;  %p702_p7 = scmp.lt.u32.totalorder %s700_s25, %s695_s21 }
  0x1f   : > { %p704_p13 = scmp.lt.u32.totalorder %s695_s21, %s979_s10 }
  0x20   : > { %p699_p6 = pneg %p698_p5  ;;  %p703_p10 = por %p702_p7, %p701_p4 }
  0x22   : > { %p705_p12 = por %p704_p13, %p703_p10 }
  0x24   : > { %p706_p1 = pnand %p705_p12, %p699_p6 }
  0x26   : > { %709 = shalt.err (!%p706_p1)
}
  0x27   : > { %s710_s7 = scalar_lea.vmem %s981_s12, 128  ;;  %s875_s8 = smov [#allocation2]  }
  0x28   : > { %p711_p2 = scmp.ne.s32.totalorder %s981_s12, %s710_s7  ;;  %s715_s9 = sshll.u32 %s875_s8, 4  ;;  %s716_s9 = int_to_ptr.vmem [resolvable:$false] %s715_s9 }
  0x29   : > { %s717_s11 = scalar_lea.vmem %s716_s9, 256  ;;  %p718_p9 = scmp.lt.s32.totalorder %s981_s12, %s716_s9 }
  0x2a   : > { %p713_p5 = pnand %p711_p2, %p697_p3  ;;  %p719_p4 = scmp.lt.s32.totalorder %s717_s11, %s710_s7 }
  0x2c   : > { %p714_p11 = pneg %p713_p5  ;;  %p720_p7 = por %p719_p4, %p718_p9 }
  0x2e   : > { %p721_p10 = pnand %p720_p7, %p714_p11 }
  0x30   : > { %724 = shalt.err (!%p721_p10)
}
  0x31   : > { %s876_s21 = smov 32   ;;  %s877_s22 = smov 2  }
  0x32   : > { %621 = dma.hbm_to_vmem [thread:$0]  (!%p985_p0), %s979_s10, 128, %s981_s12, %s211_s14, %s876_s21, %s876_s21, %s877_s22  }
  0x33   : > { %p263_p12 = scmp.lt.s32.totalorder %s873_s20, 3  ;;  %s592_s24 = sshll.u32 %s972_s5, 1 }
  0x34   : > { %s593_s25 = sshll.u32 %s869_s19, 5  ;;  %p1216_p9 = scmp.ge.s32.totalorder %s873_s20, 1 }
  0x35   : > { %s1030_s8 = scalar_lea.hbm %s1205_s1, %s593_s25  ;;  %s237_s9 = scalar_lea.vmem [#allocation5], %s592_s24 }
  0x36   : > { %p1023_p11 = pnand %p1216_p9, %p263_p12  ;;  %s246_s11 = sshll.u32 %s237_s9, 4  ;;  %s247_s11 = int_to_ptr.vmem [resolvable:$true] %s246_s11 }
  0x37   : > { %s234_s10 = scalar_lea.sflag [#allocation6], %s972_s5  ;;  %s725_s12 = scalar_lea.hbm %s1030_s8, 32 }
  0x38   : > { %s1217_s26 = scalar_select %p1023_p11, 1, 0 }
  0x39   : > { %p726_p1 = scmp.ne.s32.totalorder %s1030_s8, %s725_s12  ;;  %s730_s22 = scalar_lea.hbm %s1205_s1, 64 }
  0x3a   : > { %p731_p2 = scmp.lt.u32.totalorder %s1030_s8, %s1205_s1  ;;  %p732_p5 = scmp.lt.u32.totalorder %s730_s22, %s725_s12 }
  0x3b   : > { %p728_p6 = pnand %p726_p1, %p697_p3  ;;  %p734_p7 = scmp.lt.u32.totalorder %s725_s12, %s1030_s8 }
  0x3c   : > { %p733_p4 = por %p732_p5, %p731_p2 }
  0x3d   : > { %p729_p13 = pneg %p728_p6 }
  0x3e   : > { %p735_p10 = por %p734_p7, %p733_p4 }
  0x40   : > { %p736_p12 = pnand %p735_p10, %p729_p13 }
  0x42   : > { %739 = shalt.err (!%p736_p12)
}
  0x43   : > { %s740_s5 = scalar_lea.vmem %s247_s11, 32  ;;  %s878_s24 = smov [#allocation5]  }
  0x44   : > { %p741_p9 = scmp.ne.s32.totalorder %s247_s11, %s740_s5  ;;  %s745_s7 = sshll.u32 %s878_s24, 4  ;;  %s746_s7 = int_to_ptr.vmem [resolvable:$false] %s745_s7 }
  0x45   : > { %s747_s9 = scalar_lea.vmem %s746_s7, 64  ;;  %p748_p8 = scmp.lt.s32.totalorder %s247_s11, %s746_s7 }
  0x46   : > { %p743_p1 = pnand %p741_p9, %p697_p3  ;;  %p749_p11 = scmp.lt.s32.totalorder %s747_s9, %s740_s5 }
  0x48   : > { %p744_p6 = pneg %p743_p1  ;;  %p750_p2 = por %p749_p11, %p748_p8 }
  0x4a   : > { %p751_p5 = pnand %p750_p2, %p744_p6 }
  0x4c   : > { %754 = shalt.err (!%p751_p5)
}
  0x4d   : > { %624 = dma.hbm_to_vmem [thread:$0]  (!%p985_p0), %s1030_s8, 32, %s247_s11, %s234_s10  }
  0x4e   : > { %p1218_p13 = scmp.ne.s32.totalorder %s1217_s26, 0 }
  0x4f   : > { %s1055_s12 = sand.u32 (!%p1218_p13), 1, %s857_s16   ;;  %p1219_p3 = scmp.ne.s32.totalorder (!%p1218_p13), %s1212_s27, 0 }
  0x50   : > { %267 = sbr.rel (%p1218_p13) target bundleno = 176 (0xb0), region = 32  ;;  %s595_s14 = sshll.u32 (!%p1218_p13), %s1055_s12, 3 }
  0x51   : > { %s270_s21 = scalar_lea.sflag (!%p1218_p13), [#allocation3], %s1055_s12  ;;  %s273_s22 = scalar_lea.vmem (!%p1218_p13), [#allocation2], %s595_s14 }
  0x57   : > { %836 = dma.done.wait (%p1219_p3), %s270_s21, 128  }
  0x58   : > { %838 = vsyncadd (%p1219_p3), %s270_s21, 4294967168  ;;  %s1064_s13 = sshll.u32 %s1055_s12, 1  ;;  %s279_s26 = scalar_lea.sflag [#allocation6], %s1055_s12 }
  0x59   : > { %s282_s8 = scalar_lea.vmem [#allocation5], %s1064_s13 }
  0x5a   : > { %840 = dma.done.wait (%p1219_p3), %s279_s26, 32  }
  0x5b   : > { %842 = vsyncadd (%p1219_p3), %s279_s26, 4294967264  ;;  %s1073_s11 = scalar_lea.vmem [#allocation7], %s1064_s13  ;;  %v879_v0 = vmov 0.0   ;;  %s324_s10 = scalar_lea.vmem [#allocation8], %s1064_s13  ;;  %v1082_v1 = vld [vmem:[%s273_s22] sm:$0x3] }
  0x5c   : > { %340 = vst [vmem:[%s1073_s11] sm:$0x3] %v879_v0  ;;  %341 = vst [vmem:[%s324_s10] sm:$0x3] %v879_v0  ;;  %p328_p8 = scmp.lt.s32.totalorder %s865_s18, 1  ;;  %v1084_v2 = vld [vmem:[%s273_s22 + $0x2] sm:$0x3]  ;;  %s605_s7 = sshll.u32 %s865_s18, 5 }
  0x5d   : > { %v1086_v3 = vld [vmem:[%s273_s22 + $0x4] sm:$0x3]  ;;  %v347_v4 = vmax.f32 %v1082_v1, %v1084_v2  ;;  %s427_s9 = sshll.u32 %s324_s10, 4  ;;  %v1093_v6 = vld [vmem:[%s273_s22 + $0x6] sm:$0x3]  ;;  %s1102_s26 = scalar_lea.hbm %s1208_s4, %s605_s7  ;;  %s1104_s9 = int_to_ptr.vmem [resolvable:$true] %s427_s9 }
  0x5e   : > { %s329_s25 = scalar_select %p328_p8, %s865_s18, 1 }
  0x5f   : > { %v350_v8 = vmax.f32 %v347_v4, %v1086_v3  ;;  %s399_s22 = scalar_lea.sflag [#allocation9], %s1055_s12  ;;  %p1220_p11 = scmp.ne.s32.totalorder %s1213_s28, 0 }
  0x60   : > { %s599_s6 = sshll.u32 %s329_s25, 1  ;;  %s755_s25 = scalar_lea.vmem %s1104_s9, 32 }
  0x61   : > { %s334_s27 = scalar_lea.vmem %s1206_s2, %s599_s6  ;;  %v1107_v10 = vmax.f32 %v350_v8, %v1093_v6  ;;  %p756_p0 = scmp.ne.s32.totalorder %s1104_s9, %s755_s25 }
  0x62   : > { %v1091_v5 = vld [vmem:[%s334_s27] sm:$0x3]  ;;  %s880_s6 = smov [#allocation8]  }
  0x63   : > { %v390_v7 = vld [vmem:[%s324_s10] sm:$0x3]  ;;  %p757_p4 = pnand %p756_p0, %p1220_p11  ;;  %s759_s5 = sshll.u32 %s880_s6, 4  ;;  %s760_s5 = int_to_ptr.vmem [resolvable:$false] %s759_s5 }
  0x64   : > { %v391_v9 = vadd.f32 %v390_v7, %v1091_v5  ;;  %s761_s24 = scalar_lea.vmem %s760_s5, 64  ;;  %p762_p10 = scmp.lt.s32.totalorder %s1104_s9, %s760_s5 }
  0x65   : > { %p758_p7 = pneg %p757_p4  ;;  %p763_p12 = scmp.lt.s32.totalorder %s761_s24, %s755_s25 }
  0x66   : > { %392 = vst [vmem:[%s324_s10] sm:$0x3] %v391_v9 }
  0x67   : > { %p764_p9 = por %p763_p12, %p762_p10 }
  0x69   : > { %p765_p1 = pnand %p764_p9, %p758_p7 }
  0x6b   : > { %768 = shalt.err (!%p765_p1)
}
  0x6c   : > { %s769_s10 = scalar_lea.hbm %s1102_s26, 32  ;;  %s773_s21 = scalar_lea.hbm %s1208_s4, 64 }
  0x6d   : > { %p770_p6 = scmp.ne.s32.totalorder %s1102_s26, %s769_s10  ;;  %p774_p13 = scmp.lt.u32.totalorder %s1102_s26, %s1208_s4 }
  0x6e   : > { %p775_p3 = scmp.lt.u32.totalorder %s773_s21, %s769_s10  ;;  %p777_p0 = scmp.lt.u32.totalorder %s769_s10, %s1102_s26 }
  0x6f   : > { %p771_p2 = pnand %p770_p6, %p1220_p11 }
  0x70   : > { %p776_p8 = por %p775_p3, %p774_p13 }
  0x71   : > { %p772_p5 = pneg %p771_p2 }
  0x72   : > { %p778_p4 = por %p777_p0, %p776_p8 }
  0x74   : > { %p779_p7 = pnand %p778_p4, %p772_p5 }
  0x76   : > { %782 = shalt.err (!%p779_p7)
}
  0x77   : > { %615 = dma.vmem_to_hbm [thread:$0]  (%p1220_p11), %s1104_s9, 32, %s1102_s26, %s399_s22   ;;  %v354_v11 = vsub.f32 %v1082_v1, %v1107_v10  ;;  %v361_v12 = vsub.f32 %v1084_v2, %v1107_v10  ;;  %v368_v13 = vsub.f32 %v1086_v3, %v1107_v10  ;;  %v375_v14 = vsub.f32 %v1093_v6, %v1107_v10  ;;  %v342_v22 = vld [vmem:[%s282_s8] sm:$0x3]  ;;  %v385_v38 = vld [vmem:[%s1073_s11] sm:$0x3] }
  0x78   : > { %vm358_vm0 = vcmp.eq.s32.totalorder %v342_v22, 0  ;;  %vm365_vm1 = vcmp.eq.s32.totalorder %v342_v22, 1  ;;  %vm372_vm2 = vcmp.eq.s32.totalorder %v342_v22, 2  ;;  %vm379_vm3 = vcmp.eq.s32.totalorder %v342_v22, 3  ;;  %s413_s13 = sshll.u32 %s1073_s11, 4  ;;  %s1154_s26 = scalar_lea.hbm %s1207_s3, %s605_s7  ;;  %s1156_s13 = int_to_ptr.vmem [resolvable:$true] %s413_s13 }
  0x79   : > { %v355_v15 = vmul.f32 1.442695, %v354_v11  ;;  %v362_v16 = vmul.f32 1.442695, %v361_v12  ;;  %v369_v17 = vmul.f32 1.442695, %v368_v13 }
  0x7a   : > { %v376_v18 = vmul.f32 1.442695, %v375_v14  ;;  %v359_v27 = vsel %vm358_vm0, %v1082_v1, 0.0  ;;  %v366_v28 = vsel %vm365_vm1, %v1084_v2, 0.0  ;;  %v373_v30 = vsel %vm372_vm2, %v1086_v3, 0.0  ;;  %s394_s22 = scalar_lea.sflag [#allocation4], %s1055_s12 }
  0x7b   : > { %685 = vpow2.f32 %v355_v15  ;;  %v367_v29 = vadd.f32 %v366_v28, %v359_v27  ;;  %v380_v32 = vsel %vm379_vm3, %v1093_v6, 0.0  ;;  %s783_s25 = scalar_lea.vmem %s1156_s13, 32  ;;  %s881_s24 = smov [#allocation7]  }
  0x7c   : > { %687 = vpow2.f32 %v362_v16  ;;  %p784_p10 = scmp.ne.s32.totalorder %s1156_s13, %s783_s25  ;;  %s787_s10 = sshll.u32 %s881_s24, 4  ;;  %s788_s10 = int_to_ptr.vmem [resolvable:$false] %s787_s10 }
  0x7d   : > { %689 = vpow2.f32 %v369_v17  ;;  %v374_v31 = vadd.f32 %v373_v30, %v367_v29  ;;  %s789_s18 = scalar_lea.vmem %s788_s10, 64  ;;  %p790_p1 = scmp.lt.s32.totalorder %s1156_s13, %s788_s10 }
  0x7e   : > { %691 = vpow2.f32 %v376_v18  ;;  %p785_p12 = pnand %p784_p10, %p1220_p11  ;;  %p791_p6 = scmp.lt.s32.totalorder %s789_s18, %s783_s25 }
  0x7f   : > { %v381_v34 = vadd.f32 %v380_v32, %v374_v31 }
  0x80   : > { %p786_p9 = pneg %p785_p12  ;;  %p792_p2 = por %p791_p6, %p790_p1 }
  0x82   : > { %p793_p5 = pnand %p792_p2, %p786_p9 }
  0x85   : > { %v686_v19 = vpop.eup %685 }
  0x86   : > { %v688_v20 = vpop.eup %687 }
  0x87   : > { %v690_v21 = vpop.eup %689  ;;  %v364_v23 = vadd.f32 %v688_v20, %v686_v19 }
  0x88   : > { %v692_v24 = vpop.eup %691 }
  0x89   : > { %v371_v25 = vadd.f32 %v690_v21, %v364_v23 }
  0x8b   : > { %v378_v26 = vadd.f32 %v692_v24, %v371_v25 }
  0x8d   : > { %693 = vlog2.f32 %v378_v26 }
  0x97   : > { %v694_v33 = vpop.eup %693 }
  0x98   : > { %v383_v35 = vmul.f32 0.6931472, %v694_v33 }
  0x9a   : > { %v384_v36 = vadd.f32 %v383_v35, %v1107_v10 }
  0x9c   : > { %v386_v37 = vsub.f32 %v384_v36, %v381_v34 }
  0x9e   : > { %v387_v39 = vmul.f32 %v386_v37, %v1091_v5 }
  0xa0   : > { %v388_v40 = vadd.f32 %v387_v39, %v385_v38 }
  0xa2   : > { %389 = vst [vmem:[%s1073_s11] sm:$0x3] %v388_v40 }
  0xa3   : > { %796 = shalt.err (!%p793_p5)
}
  0xa4   : > { %s797_s12 = scalar_lea.hbm %s1154_s26, 32  ;;  %s801_s27 = scalar_lea.hbm %s1207_s3, 64 }
  0xa5   : > { %p798_p13 = scmp.ne.s32.totalorder %s1154_s26, %s797_s12  ;;  %p802_p0 = scmp.lt.u32.totalorder %s1154_s26, %s1207_s3 }
  0xa6   : > { %p803_p4 = scmp.lt.u32.totalorder %s801_s27, %s797_s12  ;;  %p805_p10 = scmp.lt.u32.totalorder %s797_s12, %s1154_s26 }
  0xa7   : > { %p799_p3 = pnand %p798_p13, %p1220_p11 }
  0xa8   : > { %p804_p7 = por %p803_p4, %p802_p0 }
  0xa9   : > { %p800_p8 = pneg %p799_p3 }
  0xaa   : > { %p806_p12 = por %p805_p10, %p804_p7 }
  0xac   : > { %p807_p9 = pnand %p806_p12, %p800_p8 }
  0xae   : > { %810 = shalt.err (!%p807_p9)
}
  0xaf   : > { %614 = dma.vmem_to_hbm [thread:$0]  (%p1220_p11), %s1156_s13, 32, %s1154_s26, %s394_s22  }
  0xb0 PF: > { %s439_s6 = sand.u32 1, %s853_s15   ;;  %p1221_p1 = scmp.ne.s32.totalorder %s1214_s30, 0 }
  0xb1   : > { %p1222_p6 = scmp.ge.s32.totalorder %s873_s20, 2  ;;  %s440_s5 = scalar_lea.sflag [#allocation4], %s439_s6 }
  0xb3   : > { %p626_p2 = pnand %p1222_p6, %p1221_p1 }
  0xb5   : > { %844 = dma.done.wait (!%p626_p2), %s440_s5, 32  }
  0xb6   : > { %846 = vsyncadd (!%p626_p2), %s440_s5, 4294967264  ;;  %s449_s8 = scalar_lea.sflag [#allocation9], %s439_s6 }
  0xb7   : > { %848 = dma.done.wait (!%p626_p2), %s449_s8, 32  }
  0xb8   : > { %850 = vsyncadd (!%p626_p2), %s449_s8, 4294967264  ;;  %s27_s20 = sadd.s32 1, %s873_s20   ;;  %s1223_s15 = smov %s857_s16 }
  0xb9   : > { %p24_p5 = scmp.ge.s32.totalorder %s27_s20, 4   ;;  %s1224_s16 = smov %s861_s17 }
  0xba   : > { %s1225_s17 = smov %s963_s29  ;;  %s1226_s18 = smov %s869_s19 }
  0xbb   : > { %s1227_s19 = smov %s1229_s23  ;;  %26 = sbr.rel (!%p24_p5) target bundleno = 10 (0xa), region = 117 }
  0xc2   :  { %454 = vsyncpa [#allocation3], 1 }
  0xc3   :  { %456 = vsyncpa [#allocation3 + $0x1], 1 }
  0xc4   :  { %457 = vsyncpa [#allocation6], 1 }
  0xc5   :  { %459 = vsyncpa [#allocation6 + $0x1], 1 }
  0xc6   :  { %460 = vsyncpa [#allocation4], 1 }
  0xc7   :  { %462 = vsyncpa [#allocation4 + $0x1], 1 }
  0xc8   :  { %463 = vsyncpa [#allocation9], 1 }
  0xc9   :  { %465 = vsyncpa [#allocation9 + $0x1], 1 }

</bundles_post_ra>
